<compile_context>
chip_gen: v7x
topology: tpu7x:2x2x1
jax: 0.10.0
libtpu: 0.0.40
codegen_flags: <defaults>
</compile_context>

<pallas_src>
import functools

import jax
import jax.numpy as jnp
from jax.experimental import pallas as pl
from jax.experimental.pallas import tpu as pltpu


def prenet_kernel(seed_ref, x_ref, w1_ref, b1_ref, w2_ref, b2_ref, o_ref, *,
                  dropout_rate, tile_rows, n_units, compute_dtype):
    """Fused 2-layer prenet: (Linear -> ReLU -> dropout) x 2 on one row tile."""
    apply_dropout = dropout_rate > 0.0  # static (trace-time) branch

    if apply_dropout:
        pid = pl.program_id(0)
        seed_u = seed_ref[0].astype(jnp.uint32)
        # Per-tile counter offset so every grid step draws distinct bits.
        # Host side asserts pad_rows * n_units < 2**32 so this never wraps.
        base = pid.astype(jnp.uint32) * jnp.uint32(tile_rows * n_units)

        shape = (tile_rows, n_units)
        rows = jax.lax.broadcasted_iota(jnp.int32, shape, 0)
        cols = jax.lax.broadcasted_iota(jnp.int32, shape, 1)
        idx = (rows * n_units + cols).astype(jnp.uint32) + base

        # murmur3 fmix32 finalizer over (global index ^ seed); computed ONCE,
        # shared by both layers via independent 16-bit halves.
        h32 = idx ^ seed_u
        h32 = (h32 ^ (h32 >> 16)) * jnp.uint32(0x85EBCA6B)
        h32 = (h32 ^ (h32 >> 13)) * jnp.uint32(0xC2B2AE35)
        h32 = h32 ^ (h32 >> 16)

        thr16 = jnp.uint32(min(int(round(dropout_rate * 65536.0)), 65535))
        keep1 = (h32 & jnp.uint32(0xFFFF)) >= thr16
        keep2 = (h32 >> 16) >= thr16

    # ---- layer 1: Linear -> ReLU -> dropout (scale pre-folded into W1/b1) --
    h = jnp.dot(x_ref[...].astype(compute_dtype), w1_ref[...],
                preferred_element_type=jnp.float32)
    h = jnp.maximum(h + b1_ref[...], 0.0)
    if apply_dropout:
        h = jnp.where(keep1, h, 0.0)
    h = h.astype(compute_dtype)

    # ---- layer 2: Linear -> ReLU -> dropout (scale pre-folded into W2/b2) --
    h2 = jnp.dot(h, w2_ref[...], preferred_element_type=jnp.float32)
    h2 = jnp.maximum(h2 + b2_ref[...], 0.0)
    if apply_dropout:
        h2 = jnp.where(keep2, h2, 0.0)
    o_ref[...] = h2.astype(o_ref.dtype)


def _round_up(v, m):
    return ((v + m - 1) // m) * m


def prenet_forward(x, params, seed, *, dropout_rate=0.5, tile_rows=2048,
                   use_bf16_matmul=True, out_dtype=jnp.float32):
    """x: (B, ..., idim) float32.  Returns (B, ..., n_units) in out_dtype."""
    assert 0.0 <= dropout_rate < 1.0, "dropout_rate must be in [0, 1)"
    w1, b1, w2, b2 = params
    idim, n_units = w1.shape

    lead_shape = x.shape[:-1]
    n_rows = 1
    for d in lead_shape:
        n_rows *= d
    n_rows = max(n_rows, 1)

    compute_dtype = jnp.bfloat16 if use_bf16_matmul else jnp.float32

    # ---- row tiling: multiple of 16, balanced, >=2 grid steps when possible
    full = _round_up(n_rows, 16)
    if full <= tile_rows:
        n_tiles = 2 if n_rows >= 256 else 1   # shard across 2 TCs when big enough
    else:
        n_tiles = pl.cdiv(full, tile_rows)
    tm = _round_up(pl.cdiv(n_rows, n_tiles), 16)
    pad_rows = tm * n_tiles

    # Counter-hash uses a uint32 global element index; guard against wrap.
    assert pad_rows * n_units < 2 ** 32, (
        "dropout counter would wrap; widen the hash counter scheme")

    x2 = x.reshape(n_rows, idim).astype(jnp.float32)   # f32 in HBM; cast in-kernel
    if pad_rows != n_rows:
        x2 = jnp.pad(x2, ((0, pad_rows - n_rows), (0, 0)))

    # Fold the dropout keep-scale into weights/biases (relu(z)*s == relu(z*s)).
    scale = 1.0 / (1.0 - dropout_rate) if dropout_rate > 0.0 else 1.0
    w1c = (w1 * scale).astype(compute_dtype)
    w2c = (w2 * scale).astype(compute_dtype)
    b1_2d = (b1 * scale).reshape(1, n_units).astype(jnp.float32)
    b2_2d = (b2 * scale).reshape(1, n_units).astype(jnp.float32)

    # Preserve all 32 seed bits through an int32 SMEM scalar.
    s = int(seed) & 0xFFFFFFFF
    if s >= (1 << 31):
        s -= (1 << 32)
    seed_arr = jnp.asarray([s], dtype=jnp.int32)

    kernel = functools.partial(prenet_kernel, dropout_rate=dropout_rate,
                               tile_rows=tm, n_units=n_units,
                               compute_dtype=compute_dtype)

    grid = (n_tiles,)
    w_itemsize = jnp.dtype(compute_dtype).itemsize
    out_itemsize = jnp.dtype(out_dtype).itemsize
    cost = pl.CostEstimate(
        flops=2 * pad_rows * (idim + n_units) * n_units,
        transcendentals=0,
        bytes_accessed=(pad_rows * idim * 4                       # x in (f32)
                        + (w1c.size + w2c.size) * w_itemsize      # weights
                        + (b1.size + b2.size) * 4                 # biases
                        + pad_rows * n_units * out_itemsize))     # out

    out = pl.pallas_call(
        kernel,
        out_shape=jax.ShapeDtypeStruct((pad_rows, n_units), out_dtype),
        grid_spec=pltpu.PrefetchScalarGridSpec(
            num_scalar_prefetch=1,
            grid=grid,
            in_specs=[
                pl.BlockSpec((tm, idim), lambda i, s: (i, 0)),
                pl.BlockSpec((idim, n_units), lambda i, s: (0, 0)),
                pl.BlockSpec((1, n_units), lambda i, s: (0, 0)),
                pl.BlockSpec((n_units, n_units), lambda i, s: (0, 0)),
                pl.BlockSpec((1, n_units), lambda i, s: (0, 0)),
            ],
            out_specs=pl.BlockSpec((tm, n_units), lambda i, s: (i, 0)),
        ),
        compiler_params=pltpu.CompilerParams(
            dimension_semantics=("parallel",),
            vmem_limit_bytes=48 * 1024 * 1024),
        cost_estimate=cost,
    )(seed_arr, x2, w1c, b1_2d, w2c, b2_2d)

    out = out[:n_rows]
    return out.reshape(*lead_shape, n_units)


def init_prenet_params(key, idim, n_units):
    """Deterministic init matching torch.nn.Linear shapes (stored transposed)."""
    k1, k2, k3, k4 = jax.random.split(key, 4)
    bound1 = 1.0 / (idim ** 0.5)
    bound2 = 1.0 / (n_units ** 0.5)
    w1 = jax.random.uniform(k1, (idim, n_units), jnp.float32, -bound1, bound1)
    b1 = jax.random.uniform(k2, (n_units,), jnp.float32, -bound1, bound1)
    w2 = jax.random.uniform(k3, (n_units, n_units), jnp.float32, -bound2, bound2)
    b2 = jax.random.uniform(k4, (n_units,), jnp.float32, -bound2, bound2)
    return (w1, b1, w2, b2)


def prenet_reference_nodrop(x, params, compute_dtype=jnp.bfloat16):
    """Pure-JAX reference for dropout_rate=0 (same bf16 matmul casting)."""
    w1, b1, w2, b2 = params
    lead = x.shape[:-1]
    x2 = x.reshape(-1, x.shape[-1])
    h = jnp.dot(x2.astype(compute_dtype), w1.astype(compute_dtype),
                preferred_element_type=jnp.float32) + b1
    h = jnp.maximum(h, 0.0)
    h2 = jnp.dot(h.astype(compute_dtype), w2.astype(compute_dtype),
                 preferred_element_type=jnp.float32) + b2
    h2 = jnp.maximum(h2, 0.0)
    return h2.reshape(*lead, -1)


if __name__ == "__main__":
    key = jax.random.PRNGKey(0)
    k_param, k_x = jax.random.split(key)

    B, T, idim, n_units = 2, 8, 80, 256
    params = init_prenet_params(k_param, idim, n_units)
    x = jax.random.normal(k_x, (B, T, idim), dtype=jnp.float32)

    # 1) dropout_rate = 0: exact functional check against pure-JAX reference.
    y0 = prenet_forward(x, params, seed=1234, dropout_rate=0.0)
    y0 = jax.block_until_ready(y0)
    y_ref = jax.block_until_ready(prenet_reference_nodrop(x, params))
    assert y0.shape == (B, T, n_units), y0.shape
    assert jnp.allclose(y0, y_ref, rtol=5e-3, atol=5e-3), (
        float(jnp.max(jnp.abs(y0 - y_ref))))

    # 2) dropout_rate = 0.5 (module always applies dropout): shape / finiteness
    #    and a loose statistical sanity check on the zero fraction.
    y = prenet_forward(x, params, seed=1234, dropout_rate=0.5)
    y = jax.block_until_ready(y)
    assert y.shape == (B, T, n_units), y.shape
    assert y.dtype == jnp.float32
    assert bool(jnp.all(jnp.isfinite(y)))
    zero_frac = float(jnp.mean((y == 0.0).astype(jnp.float32)))
    assert zero_frac > 0.45, zero_frac   # >= dropout rate (relu adds more zeros)

    print("KERNEL_OK")
</pallas_src>

<mosaic_0001>
module attributes {stable_mosaic.version = 11 : i64} {
  func.func @prenet_kernel(%arg0: i32, %arg1: memref<1xi32, #tpu.memory_space<smem>>, %arg2: memref<16x80xf32, #tpu.memory_space<vmem>>, %arg3: memref<80x256xbf16, #tpu.memory_space<vmem>>, %arg4: memref<1x256xf32, #tpu.memory_space<vmem>>, %arg5: memref<256x256xbf16, #tpu.memory_space<vmem>>, %arg6: memref<1x256xf32, #tpu.memory_space<vmem>>, %arg7: memref<16x256xf32, #tpu.memory_space<vmem>>) attributes {dimension_semantics = [#tpu.dimension_semantics<parallel>], iteration_bounds = array<i64: 1>, scalar_prefetch = 1 : i64, scratch_operands = 0 : i64, tpu.core_type = #tpu.core_type<tc>, window_params = [{transform_indices = @transform_0, window_bounds = array<i64: 16, 80>}, {pipeline_mode = #tpu.pipeline_mode<synchronous>, transform_indices = @transform_1, window_bounds = array<i64: 80, 256>}, {pipeline_mode = #tpu.pipeline_mode<synchronous>, transform_indices = @transform_2, window_bounds = array<i64: 1, 256>}, {pipeline_mode = #tpu.pipeline_mode<synchronous>, transform_indices = @transform_3, window_bounds = array<i64: 256, 256>}, {pipeline_mode = #tpu.pipeline_mode<synchronous>, transform_indices = @transform_4, window_bounds = array<i64: 1, 256>}, {transform_indices = @transform_5, window_bounds = array<i64: 16, 256>}]} {
    %c0 = arith.constant 0 : index
    %c0_0 = arith.constant 0 : index
    %0 = vector.load %arg2[%c0, %c0_0] : memref<16x80xf32, #tpu.memory_space<vmem>>, vector<16x80xf32>
    %1 = arith.truncf %0 : vector<16x80xf32> to vector<16x80xbf16>
    %c0_1 = arith.constant 0 : index
    %c0_2 = arith.constant 0 : index
    %2 = vector.load %arg3[%c0_1, %c0_2] : memref<80x256xbf16, #tpu.memory_space<vmem>>, vector<80x256xbf16>
    %cst = arith.constant dense<0.000000e+00> : vector<16x256xf32>
    %3 = tpu.matmul %1, %2, %cst {dimension_numbers = #tpu.dot_dimension_numbers<[1], [0], [0], [1], [0, 0, 1, 1], [], []>} : vector<16x80xbf16>, vector<80x256xbf16>, vector<16x256xf32> -> vector<16x256xf32>
    %c0_3 = arith.constant 0 : index
    %c0_4 = arith.constant 0 : index
    %4 = vector.load %arg4[%c0_3, %c0_4] : memref<1x256xf32, #tpu.memory_space<vmem>>, vector<1x256xf32>
    %5 = vector.broadcast %4 : vector<1x256xf32> to vector<16x256xf32>
    %6 = arith.addf %3, %5 : vector<16x256xf32>
    %cst_5 = arith.constant 0.000000e+00 : f32
    %7 = vector.broadcast %cst_5 : f32 to vector<16x256xf32>
    %8 = arith.maximumf %6, %7 : vector<16x256xf32>
    %9 = arith.truncf %8 : vector<16x256xf32> to vector<16x256xbf16>
    %c0_6 = arith.constant 0 : index
    %c0_7 = arith.constant 0 : index
    %10 = vector.load %arg5[%c0_6, %c0_7] : memref<256x256xbf16, #tpu.memory_space<vmem>>, vector<256x256xbf16>
    %cst_8 = arith.constant dense<0.000000e+00> : vector<16x256xf32>
    %11 = tpu.matmul %9, %10, %cst_8 {dimension_numbers = #tpu.dot_dimension_numbers<[1], [0], [0], [1], [0, 0, 1, 1], [], []>} : vector<16x256xbf16>, vector<256x256xbf16>, vector<16x256xf32> -> vector<16x256xf32>
    %c0_9 = arith.constant 0 : index
    %c0_10 = arith.constant 0 : index
    %12 = vector.load %arg6[%c0_9, %c0_10] : memref<1x256xf32, #tpu.memory_space<vmem>>, vector<1x256xf32>
    %13 = vector.broadcast %12 : vector<1x256xf32> to vector<16x256xf32>
    %14 = arith.addf %11, %13 : vector<16x256xf32>
    %cst_11 = arith.constant 0.000000e+00 : f32
    %15 = vector.broadcast %cst_11 : f32 to vector<16x256xf32>
    %16 = arith.maximumf %14, %15 : vector<16x256xf32>
    %c0_12 = arith.constant 0 : index
    %c0_13 = arith.constant 0 : index
    %17 = vector.load %arg7[%c0_12, %c0_13] : memref<16x256xf32, #tpu.memory_space<vmem>>, vector<16x256xf32>
    tpu.vector_store %arg7[%c0_12, %c0_13], %16 {strides = array<i32>} : memref<16x256xf32, #tpu.memory_space<vmem>>, vector<16x256xf32>,
    return
  }
  func.func @transform_0(%arg0: i32, %arg1: memref<1xi32, #tpu.memory_space<smem>>) -> (i32, i32) {
    %c0_i32 = arith.constant 0 : i32
    %c0_i32_0 = arith.constant 0 : i32
    return %arg0, %c0_i32 : i32, i32
  }
  func.func @transform_1(%arg0: i32, %arg1: memref<1xi32, #tpu.memory_space<smem>>) -> (i32, i32) {
    %c0_i32 = arith.constant 0 : i32
    %c0_i32_0 = arith.constant 0 : i32
    %c0_i32_1 = arith.constant 0 : i32
    return %c0_i32, %c0_i32_0 : i32, i32
  }
  func.func @transform_2(%arg0: i32, %arg1: memref<1xi32, #tpu.memory_space<smem>>) -> (i32, i32) {
    %c0_i32 = arith.constant 0 : i32
    %c0_i32_0 = arith.constant 0 : i32
    %c0_i32_1 = arith.constant 0 : i32
    return %c0_i32, %c0_i32_0 : i32, i32
  }
  func.func @transform_3(%arg0: i32, %arg1: memref<1xi32, #tpu.memory_space<smem>>) -> (i32, i32) {
    %c0_i32 = arith.constant 0 : i32
    %c0_i32_0 = arith.constant 0 : i32
    %c0_i32_1 = arith.constant 0 : i32
    return %c0_i32, %c0_i32_0 : i32, i32
  }
  func.func @transform_4(%arg0: i32, %arg1: memref<1xi32, #tpu.memory_space<smem>>) -> (i32, i32) {
    %c0_i32 = arith.constant 0 : i32
    %c0_i32_0 = arith.constant 0 : i32
    %c0_i32_1 = arith.constant 0 : i32
    return %c0_i32, %c0_i32_0 : i32, i32
  }
  func.func @transform_5(%arg0: i32, %arg1: memref<1xi32, #tpu.memory_space<smem>>) -> (i32, i32) {
    %c0_i32 = arith.constant 0 : i32
    %c0_i32_0 = arith.constant 0 : i32
    return %arg0, %c0_i32 : i32, i32
  }
}

</mosaic_0001>

<bundles_post_ra>
// kernel: tpu_custom_call.1
= control target key start
LH: loop header
LB: loop body
LE: loop exit
PB: predicated region body
PF: predicated region fallthrough
CT: control target
= control target key end

     0   :  { %12 = vsyncpa [#allocation5], 0  ;;  %s789_s0 = inlined_call_operand.<no memory space> [shape: s32[1], index: 0, kind: input, shape index: {}]   ;;  %s790_s1 = inlined_call_operand.hbm [shape: f32[16,80], index: 1, kind: input, shape index: {}]   ;;  %s791_s2 = inlined_call_operand.hbm [shape: bf16[80,256], index: 2, kind: input, shape index: {}]   ;;  %s792_s3 = inlined_call_operand.vmem [shape: f32[1,256], index: 3, kind: input, shape index: {}]   ;;  %s793_s4 = inlined_call_operand.hbm [shape: bf16[256,256], index: 4, kind: input, shape index: {}]   ;;  %s794_s5 = inlined_call_operand.vmem [shape: f32[1,256], index: 5, kind: input, shape index: {}]   ;;  %s795_s6 = inlined_call_operand.hbm [shape: f32[16,256], index: 6, kind: output, shape index: {}]  }
   0x1   :  { %13 = vsyncpa [#allocation8], 0 }
   0x2   :  { %14 = vsyncpa [#allocation6], 0  ;;  %s675_s0 = smov [#allocation7]   ;;  %s676_s22 = smov [#allocation4]  }
   0x3   :  { %s32_s21 = sshll.u32 %s675_s0, 4  ;;  %s20_s23 = sshll.u32 %s676_s22, 4  ;;  %s33_s21 = int_to_ptr.vmem [resolvable:$true] %s32_s21  ;;  %s719_s23 = int_to_ptr.vmem [resolvable:$true] %s20_s23 }
   0x4   :  { %s581_s26 = scalar_lea.hbm %s791_s2, 1280 }
   0x5   :  { %p582_p0 = scmp.ne.s32.totalorder %s791_s2, %s581_s26  ;;  %p585_p1 = scmp.lt.u32.totalorder %s581_s26, %s791_s2 }
   0x7   :  { %p587_p2 = pnand %p585_p1, %p582_p0 }
   0x9   :  { %590 = shalt.err (!%p587_p2)
}
   0xa   :  { %s591_s7 = scalar_lea.vmem %s33_s21, 1280  ;;  %p596_p4 = scmp.lt.s32.totalorder %s33_s21, %s33_s21 }
   0xb   :  { %p592_p3 = scmp.ne.s32.totalorder %s33_s21, %s591_s7  ;;  %p597_p5 = scmp.lt.s32.totalorder %s591_s7, %s591_s7 }
   0xd   :  { %p598_p6 = por %p597_p5, %p596_p4 }
   0xf   :  { %p599_p7 = pnand %p598_p6, %p592_p3 }
  0x11   :  { %602 = shalt.err (!%p599_p7)
}
  0x12   :  { %s677_s8 = smov 128   ;;  %s678_s9 = smov 8  }
  0x13   :  { %38 = dma.hbm_to_vmem [thread:$0]  %s791_s2, 1280, %s33_s21, [#allocation8], %s677_s8, %s677_s8, %s678_s9  }
  0x14   :  { %s603_s14 = scalar_lea.hbm %s790_s1, 256 }
  0x15   :  { %p604_p8 = scmp.ne.s32.totalorder %s790_s1, %s603_s14  ;;  %p607_p9 = scmp.lt.u32.totalorder %s603_s14, %s790_s1 }
  0x17   :  { %p609_p10 = pnand %p607_p9, %p604_p8 }
  0x19   :  { %612 = shalt.err (!%p609_p10)
}
  0x1a   :  { %s613_s19 = scalar_lea.vmem %s719_s23, 256  ;;  %p618_p12 = scmp.lt.s32.totalorder %s719_s23, %s719_s23 }
  0x1b   :  { %p614_p11 = scmp.ne.s32.totalorder %s719_s23, %s613_s19  ;;  %p619_p13 = scmp.lt.s32.totalorder %s613_s19, %s613_s19 }
  0x1d   :  { %p620_p0 = por %p619_p13, %p618_p12 }
  0x1f   :  { %p621_p1 = pnand %p620_p0, %p614_p11 }
  0x21   :  { %624 = shalt.err (!%p621_p1)
}
  0x22   :  { %26 = dma.hbm_to_vmem [thread:$0]  %s790_s1, 256, %s719_s23, [#allocation5], %s677_s8, %s677_s8, %s678_s9  }
  0x23   :  { %s679_s0 = smov [#allocation9]   ;;  %s625_s25 = scalar_lea.hbm %s793_s4, 4096 }
  0x24   :  { %s46_s21 = sshll.u32 %s679_s0, 4  ;;  %p626_p2 = scmp.ne.s32.totalorder %s793_s4, %s625_s25  ;;  %s47_s21 = int_to_ptr.vmem [resolvable:$true] %s46_s21 }
  0x25   :  { %p629_p3 = scmp.lt.u32.totalorder %s625_s25, %s793_s4 }
  0x27   :  { %p631_p4 = pnand %p629_p3, %p626_p2 }
  0x29   :  { %634 = shalt.err (!%p631_p4)
}
  0x2a   :  { %s635_s30 = scalar_lea.vmem %s47_s21, 4096  ;;  %p640_p6 = scmp.lt.s32.totalorder %s47_s21, %s47_s21 }
  0x2b   :  { %p636_p5 = scmp.ne.s32.totalorder %s47_s21, %s635_s30  ;;  %p641_p7 = scmp.lt.s32.totalorder %s635_s30, %s635_s30 }
  0x2d   :  { %p642_p8 = por %p641_p7, %p640_p6 }
  0x2f   :  { %p643_p9 = pnand %p642_p8, %p636_p5 }
  0x31   :  { %646 = shalt.err (!%p643_p9)
}
  0x32   :  { %52 = dma.hbm_to_vmem [thread:$0]  %s793_s4, 4096, %s47_s21, [#allocation8], %s677_s8, %s677_s8, %s678_s9  }
  0x33   :  { %669 = dma.done.wait [#allocation5], 256  }
  0x34   :  { %670 = vsyncadd [#allocation5], 4294967040 }
  0x35   :  { %671 = dma.done.wait [#allocation8], 5376  }
  0x36   :  { %672 = vsyncadd [#allocation8], 4294961920  ;;  %v680_v0 = vmov 0   ;;  %v518_v1 = vld [vmem:[#allocation7 + $0x4] ss:$8 sps:$4 sm:$0xff]   ;;  %v65_v16 = vld [vmem:[#allocation4] sm:$0xff]  ;;  %v80_v46 = vlaneseq }
  0x37   :  { %176 = vmatprep.mubr.bf16.mxu0 %v680_v0  ;;  %v520_v2 = vld [vmem:[#allocation7] ss:$8 sps:$4 sm:$0xff]   ;;  %144 = vmatprep.subr.bf16.mxu0 %v518_v1  ;;  %v521_v3 = vld [vmem:[#allocation7 + $0x14] ss:$8 sps:$4 sm:$0xff]   ;;  %v523_v4 = vld [vmem:[#allocation7 + $0x10] ss:$8 sps:$4 sm:$0xff]  }
  0x38   :  { %145 = vmatpush1.bf16.msra.mxu0 %v520_v2  ;;  %v524_v5 = vld [vmem:[#allocation7 + $0x24] ss:$8 sps:$4 sm:$0xff]   ;;  %v526_v6 = vld [vmem:[#allocation7 + $0x20] ss:$8 sps:$4 sm:$0xff]   ;;  %v527_v7 = vld [vmem:[#allocation7 + $0x34] ss:$8 sps:$4 sm:$0xff]  }
  0x39   :  { %146 = vmatprep.subr.bf16.mxu0 %v521_v3  ;;  %v533_v8 = vld [vmem:[#allocation9 + $0x4] ss:$8 sps:$4 sm:$0xff]   ;;  %v535_v9 = vld [vmem:[#allocation9] ss:$8 sps:$4 sm:$0xff]   ;;  %v536_v10 = vld [vmem:[#allocation9 + $0x14] ss:$8 sps:$4 sm:$0xff]  }
  0x3a   :  { %v529_v11 = vld [vmem:[#allocation7 + $0x30] ss:$8 sps:$4 sm:$0xff]   ;;  %397 = vmatprep.subr.bf16.mxu1 %v533_v8  ;;  %v538_v12 = vld [vmem:[#allocation9 + $0x10] ss:$8 sps:$4 sm:$0xff]   ;;  %v530_v13 = vld [vmem:[#allocation7 + $0x44] ss:$8 sps:$4 sm:$0xff]  }
  0x3b   :  { %398 = vmatpush1.bf16.msra.mxu1 %v535_v9  ;;  %v539_v14 = vld [vmem:[#allocation9 + $0x24] ss:$8 sps:$4 sm:$0xff]   ;;  %v532_v15 = vld [vmem:[#allocation7 + $0x40] ss:$8 sps:$4 sm:$0xff]   ;;  %v541_v18 = vld [vmem:[#allocation9 + $0x20] ss:$8 sps:$4 sm:$0xff]  }
  0x3c   :  { %147 = vmatpush1.bf16.msra.mxu0 %v523_v4  ;;  %399 = vmatprep.subr.bf16.mxu1 %v536_v10  ;;  %v66_v17 = vld [vmem:[#allocation4 + $0x8] sm:$0xff]  ;;  %v542_v19 = vld [vmem:[#allocation9 + $0x34] ss:$8 sps:$4 sm:$0xff]   ;;  %vm140_vm0 = vcmask 654336   ;;  %v544_v21 = vld [vmem:[#allocation9 + $0x30] ss:$8 sps:$4 sm:$0xff]  }
  0x3d   :  { %148 = vmatprep.subr.bf16.mxu0 %v524_v5  ;;  %v67_v20 = vpack.c.bf16 %v66_v17, %v65_v16  ;;  %v545_v22 = vld [vmem:[#allocation9 + $0x44] ss:$8 sps:$4 sm:$0xff]   ;;  %v547_v23 = vld [vmem:[#allocation9 + $0x40] ss:$8 sps:$4 sm:$0xff]   ;;  %v548_v24 = vld [vmem:[#allocation9 + $0x54] ss:$8 sps:$4 sm:$0xff]  }
  0x3e   :  { %v550_v25 = vld [vmem:[#allocation9 + $0x50] ss:$8 sps:$4 sm:$0xff]   ;;  %v551_v26 = vld [vmem:[#allocation9 + $0x64] ss:$8 sps:$4 sm:$0xff]   ;;  %v553_v27 = vld [vmem:[#allocation9 + $0x60] ss:$8 sps:$4 sm:$0xff]  }
  0x3f   :  { %400 = vmatpush1.bf16.msra.mxu1 %v538_v12  ;;  %v554_v28 = vld [vmem:[#allocation9 + $0x74] ss:$8 sps:$4 sm:$0xff]   ;;  %v556_v29 = vld [vmem:[#allocation9 + $0x70] ss:$8 sps:$4 sm:$0xff]   ;;  %v557_v30 = vld [vmem:[#allocation9 + $0x84] ss:$8 sps:$4 sm:$0xff]  }
  0x40   :  { %149 = vmatpush1.bf16.msra.mxu0 %v526_v6  ;;  %401 = vmatprep.subr.bf16.mxu1 %v539_v14  ;;  %v559_v31 = vld [vmem:[#allocation9 + $0x80] ss:$8 sps:$4 sm:$0xff]   ;;  %v560_v32 = vld [vmem:[#allocation9 + $0x94] ss:$8 sps:$4 sm:$0xff]   ;;  %v562_v33 = vld [vmem:[#allocation9 + $0x90] ss:$8 sps:$4 sm:$0xff]  }
  0x41   :  { %150 = vmatprep.subr.bf16.mxu0 %v527_v7  ;;  %v563_v34 = vld [vmem:[#allocation9 + $0xa4] ss:$8 sps:$4 sm:$0xff]   ;;  %v565_v35 = vld [vmem:[#allocation9 + $0xa0] ss:$8 sps:$4 sm:$0xff]   ;;  %v566_v36 = vld [vmem:[#allocation9 + $0xb4] ss:$8 sps:$4 sm:$0xff]  }
  0x42   :  { %v568_v37 = vld [vmem:[#allocation9 + $0xb0] ss:$8 sps:$4 sm:$0xff]   ;;  %v569_v38 = vld [vmem:[#allocation9 + $0xc4] ss:$8 sps:$4 sm:$0xff]   ;;  %v571_v39 = vld [vmem:[#allocation9 + $0xc0] ss:$8 sps:$4 sm:$0xff]  }
  0x43   :  { %402 = vmatpush1.bf16.msra.mxu1 %v541_v18  ;;  %v572_v40 = vld [vmem:[#allocation9 + $0xd4] ss:$8 sps:$4 sm:$0xff]   ;;  %v574_v41 = vld [vmem:[#allocation9 + $0xd0] ss:$8 sps:$4 sm:$0xff]   ;;  %v575_v42 = vld [vmem:[#allocation9 + $0xe4] ss:$8 sps:$4 sm:$0xff]  }
  0x44   :  { %151 = vmatpush1.bf16.msra.mxu0 %v529_v11  ;;  %403 = vmatprep.subr.bf16.mxu1 %v542_v19  ;;  %v577_v43 = vld [vmem:[#allocation9 + $0xe0] ss:$8 sps:$4 sm:$0xff]   ;;  %v578_v44 = vld [vmem:[#allocation9 + $0xf4] ss:$8 sps:$4 sm:$0xff]   ;;  %v580_v45 = vld [vmem:[#allocation9 + $0xf0] ss:$8 sps:$4 sm:$0xff]  }
  0x45   :  { %152 = vmatprep.subr.bf16.mxu0 %v530_v13  ;;  %v81_v47 = vshrl.u32 %v80_v46, 7  ;;  %v78_v49 = vld [vmem:[%s792_s3] sm:$0x3]  ;;  %s681_s9 = smov [#allocation10]  }
  0x46   :  { %v225_v3 = vld [vmem:[%s794_s5] sm:$0x3]  ;;  %s453_s10 = sshll.u32 %s681_s9, 4  ;;  %s454_s10 = int_to_ptr.vmem [resolvable:$true] %s453_s10 }
  0x47   :  { %404 = vmatpush1.bf16.msra.mxu1 %v544_v21  ;;  %v82_v48 = vsub.s32 0, %v81_v47  ;;  %v86_v50 = vsub.s32 1, %v81_v47  ;;  %s647_s5 = scalar_lea.vmem %s454_s10, 512  ;;  %p652_p11 = scmp.lt.s32.totalorder %s454_s10, %s454_s10 }
  0x48   :  { %153 = vmatpush1.bf16.msra.mxu0 %v532_v15  ;;  %405 = vmatprep.subr.bf16.mxu1 %v545_v22  ;;  %p648_p10 = scmp.ne.s32.totalorder %s454_s10, %s647_s5  ;;  %p653_p12 = scmp.lt.s32.totalorder %s647_s5, %s647_s5 }
  0x49   :  { %v83_v51 = vrot.slane %v78_v49, %v82_v48  ;;  %v87_v52 = vrot.slane %v78_v49, %v86_v50  ;;  %v230_v4 = vrot.slane %v225_v3, %v82_v48  ;;  %v234_v5 = vrot.slane %v225_v3, %v86_v50 }
  0x4a   :  { %p654_p13 = por %p653_p12, %p652_p11 }
  0x4b   :  { %476 = vmatmul.mubr.msk.bf16.vlgmr.msra.gmra.mrb[0].mxu0 %vm140_vm0, %v67_v20  ;;  %406 = vmatpush1.bf16.msra.mxu1 %v547_v23 }
  0x4c   :  { %407 = vmatprep.subr.bf16.mxu1 %v548_v24  ;;  %p655_p0 = pnand %p654_p13, %p648_p10 }
  0x4f   :  { %408 = vmatpush1.bf16.msra.mxu1 %v550_v25 }
  0x50   :  { %409 = vmatprep.subr.bf16.mxu1 %v551_v26 }
  0x53   :  { %410 = vmatpush1.bf16.msra.mxu1 %v553_v27 }
  0x54   :  { %411 = vmatprep.subr.bf16.mxu1 %v554_v28 }
  0x57   :  { %412 = vmatpush1.bf16.msra.mxu1 %v556_v29 }
  0x58   :  { %413 = vmatprep.subr.bf16.mxu1 %v557_v30 }
  0x5b   :  { %414 = vmatpush1.bf16.msra.mxu1 %v559_v31 }
  0x5c   :  { %415 = vmatprep.subr.bf16.mxu1 %v560_v32 }
  0x5f   :  { %416 = vmatpush1.bf16.msra.mxu1 %v562_v33 }
  0x60   :  { %417 = vmatprep.subr.bf16.mxu1 %v563_v34 }
  0x63   :  { %418 = vmatpush1.bf16.msra.mxu1 %v565_v35 }
  0x64   :  { %419 = vmatprep.subr.bf16.mxu1 %v566_v36 }
  0x67   :  { %420 = vmatpush1.bf16.msra.mxu1 %v568_v37 }
  0x68   :  { %421 = vmatprep.subr.bf16.mxu1 %v569_v38 }
  0x6b   :  { %422 = vmatpush1.bf16.msra.mxu1 %v571_v39 }
  0x6c   :  { %423 = vmatprep.subr.bf16.mxu1 %v572_v40 }
  0x6f   :  { %424 = vmatpush1.bf16.msra.mxu1 %v574_v41 }
  0x70   :  { %425 = vmatprep.subr.bf16.mxu1 %v575_v42 }
  0x73   :  { %426 = vmatpush1.bf16.msra.mxu1 %v577_v43 }
  0x74   :  { %427 = vmatprep.subr.bf16.mxu1 %v578_v44 }
  0x77   :  { %428 = vmatpush1.bf16.msra.mxu1 %v580_v45 }
 0x11e   :  { %v178_v53 = vpop.f32.mrb[0].mxu0 }
 0x11f   :  { %v179_v54 = vadd.f32 %v178_v53, %v83_v51  ;;  %v180_v55 = vpop.f32.mrb[1].mxu0 }
 0x120   :  { %v181_v56 = vadd.f32 %v180_v55, %v87_v52  ;;  %v182_v57 = vpop.f32.mrb[2].mxu0 }
 0x121   :  { %v183_v58 = vadd.f32 %v182_v57, %v83_v51  ;;  %v184_v59 = vpop.f32.mrb[3].mxu0  ;;  %v187_v61 = vmax.f32 %v179_v54, 0.0 }
 0x122   :  { %v185_v60 = vadd.f32 %v184_v59, %v87_v52  ;;  %v188_v63 = vmax.f32 %v181_v56, 0.0 }
 0x123   :  { %v189_v62 = vmax.f32 %v183_v58, 0.0 }
 0x124   :  { %v190_v0 = vmax.f32 %v185_v60, 0.0 }
 0x125   :  { %v191_v1 = vpack.c.bf16 %v189_v62, %v187_v61 }
 0x126   :  { %v192_v2 = vpack.c.bf16 %v190_v0, %v188_v63 }
 0x128   :  { %429 = vmatprep.mubr.bf16.mxu1 %v192_v2 }
 0x129   :  { %430 = vmatmul.mubr.bf16.vlgmr.msra.gmra.mrb[0].mxu1 %v191_v1 }
 0x1fc   :  { %v431_v6 = vpop.f32.mrb[0].mxu1 }
 0x1fd   :  { %v432_v7 = vadd.f32 %v431_v6, %v230_v4  ;;  %v433_v8 = vpop.f32.mrb[1].mxu1 }
 0x1fe   :  { %v434_v9 = vadd.f32 %v433_v8, %v234_v5  ;;  %v435_v10 = vpop.f32.mrb[2].mxu1 }
 0x1ff   :  { %v440_v11 = vmax.f32 %v432_v7, 0.0  ;;  %v436_v12 = vadd.f32 %v435_v10, %v230_v4  ;;  %v437_v13 = vpop.f32.mrb[3].mxu1 }
 0x200   :  { %v441_v14 = vmax.f32 %v434_v9, 0.0  ;;  %v438_v15 = vadd.f32 %v437_v13, %v234_v5 }
 0x201   :  { %444 = vst [vmem:[#allocation10] sm:$0xff] %v440_v11  ;;  %v442_v16 = vmax.f32 %v436_v12, 0.0 }
 0x202   :  { %445 = vst [vmem:[#allocation10 + $0x8] sm:$0xff] %v441_v14  ;;  %v443_v17 = vmax.f32 %v438_v15, 0.0 }
 0x203   :  { %446 = vst [vmem:[#allocation10 + $0x10] sm:$0xff] %v442_v16 }
 0x204   :  { %447 = vst [vmem:[#allocation10 + $0x18] sm:$0xff] %v443_v17 }
 0x205   :  { %658 = shalt.err (!%p655_p0)
}
 0x206   :  { %s659_s13 = scalar_lea.hbm %s795_s6, 512 }
 0x207   :  { %p660_p1 = scmp.ne.s32.totalorder %s795_s6, %s659_s13  ;;  %p663_p2 = scmp.lt.u32.totalorder %s659_s13, %s795_s6 }
 0x209   :  { %p665_p3 = pnand %p663_p2, %p660_p1 }
 0x20b   :  { %668 = shalt.err (!%p665_p3)
}
 0x20c   :  { %s682_s18 = smov 256   ;;  %s683_s19 = smov 16  }
 0x20d   :  { %459 = dma.vmem_to_hbm [thread:$0]  %s454_s10, 512, %s795_s6, [#allocation6], %s682_s18, %s682_s18, %s683_s19  }
 0x20e   :  { %673 = dma.done.wait [#allocation6], 512  }
 0x20f   :  { %674 = vsyncadd [#allocation6], 4294966784 }
 0x210   :  { %463 = vsyncpa [#allocation5], 1 }
 0x211   :  { %464 = vsyncpa [#allocation8], 1 }
 0x212   :  { %465 = vsyncpa [#allocation6], 1 }

</bundles_post_ra>
